<compile_context>
chip_gen: v7x
topology: tpu7x:2x2x1
jax: 0.10.0
libtpu: 0.0.40
codegen_flags: <defaults>
</compile_context>

<pallas_src>
import functools

import jax
import jax.numpy as jnp
from jax.experimental import pallas as pl
from jax.experimental.pallas import tpu as pltpu

_LANE = 128
_SUBLANE = 8


def _round_up(x, m):
    return (x + m - 1) // m * m


def _fn_net_kernel(x_ref, *refs, num_hidden):
    """refs = (w_in, b_in, [w_h, b_h] * num_hidden, w_out, b_out, o_ref)."""
    o_ref = refs[-1]
    w = refs[:-1]

    # Layer 1: Linear(input_dim -> n_neurons) + Tanh
    h = jnp.dot(x_ref[...], w[0][...], preferred_element_type=jnp.float32)
    h = jnp.tanh(h + w[1][...])

    # Hidden blocks: Linear(n_neurons -> n_neurons) + Tanh (+ Dropout = identity in eval)
    idx = 2
    for _ in range(num_hidden):
        h = jnp.dot(h, w[idx][...], preferred_element_type=jnp.float32)
        h = jnp.tanh(h + w[idx + 1][...])
        idx += 2

    # Output layer: Linear(n_neurons -> output_dim)
    o = jnp.dot(h, w[idx][...], preferred_element_type=jnp.float32) + w[idx + 1][...]
    o_ref[...] = o.astype(o_ref.dtype)


def fn_net_forward(x, params, *, tile_b=512, training=False):
    """Fused MLP forward. `params` = list of (W, b) with W shaped (fan_in, fan_out)."""
    assert not training, "training-mode dropout is not implemented in this kernel"

    B, input_dim = x.shape
    num_hidden = len(params) - 2          # inner Linear+Tanh(+Dropout) blocks
    assert num_hidden >= 0
    n_neurons = params[0][0].shape[1]
    output_dim = params[-1][0].shape[1]

    in_pad = _round_up(input_dim, _LANE)
    hid_pad = _round_up(n_neurons, _LANE)
    out_pad = _round_up(output_dim, _LANE)

    # Clamp the batch tile to the (sublane-rounded) batch and pad B so the grid
    # divides evenly.  tile_b is always a multiple of 8 -> (8,128) rule holds.
    tile_b = _round_up(min(tile_b, _round_up(B, _SUBLANE)), _SUBLANE)
    assert tile_b % _SUBLANE == 0
    B_pad = _round_up(B, tile_b)
    grid = (B_pad // tile_b,)

    # Zero-pad x and the tiny weights/biases (done once per call, outside the
    # kernel; pad weights ahead of time in production and reuse).
    x_p = jnp.pad(x, ((0, B_pad - B), (0, in_pad - input_dim)))

    def pad_wb(w, b, k_pad, n_pad):
        fi, fo = w.shape
        return (jnp.pad(w, ((0, k_pad - fi), (0, n_pad - fo))),
                jnp.pad(b, ((0, 0), (0, n_pad - fo))))

    padded = [pad_wb(*params[0], in_pad, hid_pad)]
    for wb in params[1:-1]:
        padded.append(pad_wb(*wb, hid_pad, hid_pad))
    padded.append(pad_wb(*params[-1], hid_pad, out_pad))

    def resident(shape):
        # Constant block index => DMA'd once, VMEM-resident across grid steps.
        return pl.BlockSpec(shape, lambda i: (0, 0))

    flat_inputs = [x_p]
    in_specs = [pl.BlockSpec((tile_b, in_pad), lambda i: (i, 0))]
    for w, b in padded:
        flat_inputs += [w, b]
        in_specs += [resident(w.shape), resident(b.shape)]

    flops = 2 * B_pad * (in_pad * hid_pad + num_hidden * hid_pad * hid_pad
                         + hid_pad * out_pad)
    transcendentals = B_pad * hid_pad * (1 + num_hidden)
    bytes_accessed = 4 * (B_pad * (in_pad + out_pad)
                          + sum(w.size + b.size for w, b in padded))

    out = pl.pallas_call(
        functools.partial(_fn_net_kernel, num_hidden=num_hidden),
        out_shape=jax.ShapeDtypeStruct((B_pad, out_pad), x.dtype),
        grid_spec=pltpu.PrefetchScalarGridSpec(
            num_scalar_prefetch=0,
            grid=grid,
            in_specs=in_specs,
            out_specs=pl.BlockSpec((tile_b, out_pad), lambda i: (i, 0)),
        ),
        compiler_params=pltpu.CompilerParams(
            dimension_semantics=("parallel",),
        ),
        cost_estimate=pl.CostEstimate(
            flops=flops,
            transcendentals=transcendentals,
            bytes_accessed=bytes_accessed,
        ),
    )(*flat_inputs)

    return out[:B, :output_dim]


def init_params(key, input_dim, n_neurons, output_dim, n_hidden_layers=1):
    """nn.Linear default init: U(-1/sqrt(fan_in), 1/sqrt(fan_in)) for W and b."""
    sizes = ([(input_dim, n_neurons)]
             + [(n_neurons, n_neurons)] * (n_hidden_layers - 1)
             + [(n_neurons, output_dim)])
    keys = jax.random.split(key, len(sizes))
    params = []
    for k, (fi, fo) in zip(keys, sizes):
        kw, kb = jax.random.split(k)
        bound = 1.0 / jnp.sqrt(fi)
        w = jax.random.uniform(kw, (fi, fo), jnp.float32, -bound, bound)
        b = jax.random.uniform(kb, (1, fo), jnp.float32, -bound, bound)
        params.append((w, b))
    return params


def fn_net_ref(x, params):
    h = x
    for i, (w, b) in enumerate(params):
        h = h @ w + b
        if i < len(params) - 1:
            h = jnp.tanh(h)
    return h


if __name__ == "__main__":
    # FN_Net(input_dim=16, output_dim=8, n_neurons=32, n_hidden_layers=2)
    input_dim, output_dim, n_neurons, n_hidden_layers = 16, 8, 32, 2
    batch = 64

    key = jax.random.PRNGKey(0)
    kx, kp = jax.random.split(key)
    x = jax.random.normal(kx, (batch, input_dim), jnp.float32)
    params = init_params(kp, input_dim, n_neurons, output_dim, n_hidden_layers)

    # tile_b=32 just so the small demo exercises a multi-step (TC-parallel)
    # grid; production batches should use the much larger default tile.
    out = fn_net_forward(x, params, tile_b=32)
    out = jax.block_until_ready(out)

    ref = fn_net_ref(x, params)
    assert out.shape == (batch, output_dim)
    assert jnp.allclose(out, ref, atol=1e-5, rtol=1e-5), float(
        jnp.max(jnp.abs(out - ref)))

    print("KERNEL_OK")
</pallas_src>

<mosaic_0001>
module attributes {stable_mosaic.version = 11 : i64} {
  func.func @_fn_net_kernel(%arg0: i32, %arg1: memref<32x128xf32, #tpu.memory_space<vmem>>, %arg2: memref<128x128xf32, #tpu.memory_space<vmem>>, %arg3: memref<1x128xf32, #tpu.memory_space<vmem>>, %arg4: memref<128x128xf32, #tpu.memory_space<vmem>>, %arg5: memref<1x128xf32, #tpu.memory_space<vmem>>, %arg6: memref<128x128xf32, #tpu.memory_space<vmem>>, %arg7: memref<1x128xf32, #tpu.memory_space<vmem>>, %arg8: memref<32x128xf32, #tpu.memory_space<vmem>>) attributes {dimension_semantics = [#tpu.dimension_semantics<parallel>], iteration_bounds = array<i64: 2>, scalar_prefetch = 0 : i64, scratch_operands = 0 : i64, tpu.core_type = #tpu.core_type<tc>, window_params = [{transform_indices = @transform_0, window_bounds = array<i64: 32, 128>}, {pipeline_mode = #tpu.pipeline_mode<synchronous>, transform_indices = @transform_1, window_bounds = array<i64: 128, 128>}, {pipeline_mode = #tpu.pipeline_mode<synchronous>, transform_indices = @transform_2, window_bounds = array<i64: 1, 128>}, {pipeline_mode = #tpu.pipeline_mode<synchronous>, transform_indices = @transform_3, window_bounds = array<i64: 128, 128>}, {pipeline_mode = #tpu.pipeline_mode<synchronous>, transform_indices = @transform_4, window_bounds = array<i64: 1, 128>}, {pipeline_mode = #tpu.pipeline_mode<synchronous>, transform_indices = @transform_5, window_bounds = array<i64: 128, 128>}, {pipeline_mode = #tpu.pipeline_mode<synchronous>, transform_indices = @transform_6, window_bounds = array<i64: 1, 128>}, {transform_indices = @transform_7, window_bounds = array<i64: 32, 128>}]} {
    %c0 = arith.constant 0 : index
    %c0_0 = arith.constant 0 : index
    %0 = vector.load %arg1[%c0, %c0_0] : memref<32x128xf32, #tpu.memory_space<vmem>>, vector<32x128xf32>
    %c0_1 = arith.constant 0 : index
    %c0_2 = arith.constant 0 : index
    %1 = vector.load %arg2[%c0_1, %c0_2] : memref<128x128xf32, #tpu.memory_space<vmem>>, vector<128x128xf32>
    %cst = arith.constant dense<0.000000e+00> : vector<32x128xf32>
    %2 = tpu.matmul %0, %1, %cst {dimension_numbers = #tpu.dot_dimension_numbers<[1], [0], [0], [1], [0, 0, 1, 1], [], []>} : vector<32x128xf32>, vector<128x128xf32>, vector<32x128xf32> -> vector<32x128xf32>
    %c0_3 = arith.constant 0 : index
    %c0_4 = arith.constant 0 : index
    %3 = vector.load %arg3[%c0_3, %c0_4] : memref<1x128xf32, #tpu.memory_space<vmem>>, vector<1x128xf32>
    %4 = vector.broadcast %3 : vector<1x128xf32> to vector<32x128xf32>
    %5 = arith.addf %2, %4 : vector<32x128xf32>
    %6 = math.tanh %5 : vector<32x128xf32>
    %c0_5 = arith.constant 0 : index
    %c0_6 = arith.constant 0 : index
    %7 = vector.load %arg4[%c0_5, %c0_6] : memref<128x128xf32, #tpu.memory_space<vmem>>, vector<128x128xf32>
    %cst_7 = arith.constant dense<0.000000e+00> : vector<32x128xf32>
    %8 = tpu.matmul %6, %7, %cst_7 {dimension_numbers = #tpu.dot_dimension_numbers<[1], [0], [0], [1], [0, 0, 1, 1], [], []>} : vector<32x128xf32>, vector<128x128xf32>, vector<32x128xf32> -> vector<32x128xf32>
    %c0_8 = arith.constant 0 : index
    %c0_9 = arith.constant 0 : index
    %9 = vector.load %arg5[%c0_8, %c0_9] : memref<1x128xf32, #tpu.memory_space<vmem>>, vector<1x128xf32>
    %10 = vector.broadcast %9 : vector<1x128xf32> to vector<32x128xf32>
    %11 = arith.addf %8, %10 : vector<32x128xf32>
    %12 = math.tanh %11 : vector<32x128xf32>
    %c0_10 = arith.constant 0 : index
    %c0_11 = arith.constant 0 : index
    %13 = vector.load %arg6[%c0_10, %c0_11] : memref<128x128xf32, #tpu.memory_space<vmem>>, vector<128x128xf32>
    %cst_12 = arith.constant dense<0.000000e+00> : vector<32x128xf32>
    %14 = tpu.matmul %12, %13, %cst_12 {dimension_numbers = #tpu.dot_dimension_numbers<[1], [0], [0], [1], [0, 0, 1, 1], [], []>} : vector<32x128xf32>, vector<128x128xf32>, vector<32x128xf32> -> vector<32x128xf32>
    %c0_13 = arith.constant 0 : index
    %c0_14 = arith.constant 0 : index
    %15 = vector.load %arg7[%c0_13, %c0_14] : memref<1x128xf32, #tpu.memory_space<vmem>>, vector<1x128xf32>
    %16 = vector.broadcast %15 : vector<1x128xf32> to vector<32x128xf32>
    %17 = arith.addf %14, %16 : vector<32x128xf32>
    %c0_15 = arith.constant 0 : index
    %c0_16 = arith.constant 0 : index
    %18 = vector.load %arg8[%c0_15, %c0_16] : memref<32x128xf32, #tpu.memory_space<vmem>>, vector<32x128xf32>
    tpu.vector_store %arg8[%c0_15, %c0_16], %17 {strides = array<i32>} : memref<32x128xf32, #tpu.memory_space<vmem>>, vector<32x128xf32>,
    return
  }
  func.func @transform_0(%arg0: i32) -> (i32, i32) {
    %c0_i32 = arith.constant 0 : i32
    %c0_i32_0 = arith.constant 0 : i32
    return %arg0, %c0_i32 : i32, i32
  }
  func.func @transform_1(%arg0: i32) -> (i32, i32) {
    %c0_i32 = arith.constant 0 : i32
    %c0_i32_0 = arith.constant 0 : i32
    %c0_i32_1 = arith.constant 0 : i32
    return %c0_i32, %c0_i32_0 : i32, i32
  }
  func.func @transform_2(%arg0: i32) -> (i32, i32) {
    %c0_i32 = arith.constant 0 : i32
    %c0_i32_0 = arith.constant 0 : i32
    %c0_i32_1 = arith.constant 0 : i32
    return %c0_i32, %c0_i32_0 : i32, i32
  }
  func.func @transform_3(%arg0: i32) -> (i32, i32) {
    %c0_i32 = arith.constant 0 : i32
    %c0_i32_0 = arith.constant 0 : i32
    %c0_i32_1 = arith.constant 0 : i32
    return %c0_i32, %c0_i32_0 : i32, i32
  }
  func.func @transform_4(%arg0: i32) -> (i32, i32) {
    %c0_i32 = arith.constant 0 : i32
    %c0_i32_0 = arith.constant 0 : i32
    %c0_i32_1 = arith.constant 0 : i32
    return %c0_i32, %c0_i32_0 : i32, i32
  }
  func.func @transform_5(%arg0: i32) -> (i32, i32) {
    %c0_i32 = arith.constant 0 : i32
    %c0_i32_0 = arith.constant 0 : i32
    %c0_i32_1 = arith.constant 0 : i32
    return %c0_i32, %c0_i32_0 : i32, i32
  }
  func.func @transform_6(%arg0: i32) -> (i32, i32) {
    %c0_i32 = arith.constant 0 : i32
    %c0_i32_0 = arith.constant 0 : i32
    %c0_i32_1 = arith.constant 0 : i32
    return %c0_i32, %c0_i32_0 : i32, i32
  }
  func.func @transform_7(%arg0: i32) -> (i32, i32) {
    %c0_i32 = arith.constant 0 : i32
    %c0_i32_0 = arith.constant 0 : i32
    return %arg0, %c0_i32 : i32, i32
  }
}

</mosaic_0001>

<bundles_post_ra>
// kernel: tpu_custom_call.1
= control target key start
LH: loop header
LB: loop body
LE: loop exit
PB: predicated region body
PF: predicated region fallthrough
CT: control target
= control target key end

     0   :  { %12 = vsyncpa [#allocation3], 0  ;;  %s1736_s0 = inlined_call_operand.hbm [shape: f32[64,128], index: 0, kind: input, shape index: {}]   ;;  %s1737_s1 = inlined_call_operand.hbm [shape: f32[128,128], index: 1, kind: input, shape index: {}]   ;;  %s1738_s2 = inlined_call_operand.vmem [shape: f32[1,128], index: 2, kind: input, shape index: {}]   ;;  %s1739_s3 = inlined_call_operand.hbm [shape: f32[128,128], index: 3, kind: input, shape index: {}]   ;;  %s1740_s4 = inlined_call_operand.vmem [shape: f32[1,128], index: 4, kind: input, shape index: {}]   ;;  %s1741_s5 = inlined_call_operand.hbm [shape: f32[128,128], index: 5, kind: input, shape index: {}]   ;;  %s1742_s6 = inlined_call_operand.vmem [shape: f32[1,128], index: 6, kind: input, shape index: {}]   ;;  %s1743_s7 = inlined_call_operand.hbm [shape: f32[64,128], index: 7, kind: output, shape index: {}]  }
   0x1   :  { %14 = vsyncpa [#allocation3 + $0x1], 0 }
   0x2   :  { %15 = vsyncpa [#allocation6], 0 }
   0x3   :  { %16 = vsyncpa [#allocation9], 0 }
   0x4   :  { %17 = vsyncpa [#allocation4], 0 }
   0x5   :  { %19 = vsyncpa [#allocation4 + $0x1], 0  ;;  %s1446_s24 = smov 0   ;;  %s1448_s25 = smov 0  }
   0x6   :  { %s1450_s26 = smov 0   ;;  %s1452_s27 = smov 0  }
   0x7 LB: > { %s1467_s28 = sadd.s32 4294967295, %s1395_s27   ;;  %s799_s29 = sadd.s32 4294967294, %s1395_s27   ;;  %s1395_s27 = sphi %s1452_s27, %s1769_s27   ;;  %s1391_s26 = sphi %s1450_s26, %s1768_s26   ;;  %s1387_s25 = sphi %s1448_s25, %s1767_s25   ;;  %s1383_s24 = sphi %s1446_s24, %s1766_s24  }
   0x8   : > { %p45_p0 = scmp.ne.s32.totalorder %s1387_s25, %s1383_s24  ;;  %p1744_p1 = scmp.eq.s32.totalorder %s1467_s28, 0 }
   0x9   : > { %p201_p3 = scmp.eq.s32.totalorder %s799_s29, 1  ;;  %p800_p5 = scmp.ge.s32.totalorder %s1395_s27, 1 }
   0xa   : > { %p1476_p4 = por %p1744_p1, %p45_p0  ;;  %p208_p7 = scmp.lt.s32.totalorder %s1395_s27, 3 }
   0xb   : > { %p1481_p6 = por %p201_p3, %p45_p0  ;;  %s1397_s10 = smov [#allocation5]  }
   0xc   : > { %s1748_s30 = scalar_select %p1476_p4, 1, 0 }
   0xd   : > { %s1749_s8 = scalar_select %p1481_p6, 1, 0 }
   0xe   : > { %p1486_p8 = pnand %p800_p5, %p208_p7  ;;  %s220_s11 = sshll.u32 %s1397_s10, 4  ;;  %s1490_s11 = int_to_ptr.vmem [resolvable:$true] %s220_s11 }
   0xf   : > { %1750 = sst [smem:[#allocation15_spill]] %s1749_s8  ;;  %s1398_s13 = smov [#allocation7]  }
  0x10   : > { %s1751_s9 = scalar_select %p1486_p8, 1, 0 }
  0x11   : > { %p1126_p9 = pneg %p1486_p8  ;;  %s236_s14 = sshll.u32 %s1398_s13, 4  ;;  %s1501_s14 = int_to_ptr.vmem [resolvable:$true] %s236_s14 }
  0x12   : > { %s1399_s15 = smov [#allocation8]   ;;  %s1207_s19 = scalar_lea.hbm %s1737_s1, 2048 }
  0x13   : > { %p1497_p11 = pnand %p1126_p9, %p1744_p1  ;;  %s1503_s16 = sshll.u32 %s1399_s15, 4  ;;  %s253_s16 = int_to_ptr.vmem [resolvable:$true] %s1503_s16 }
  0x14   : > { %p1208_p12 = scmp.ne.s32.totalorder %s1737_s1, %s1207_s19  ;;  %p1214_p5 = scmp.lt.u32.totalorder %s1207_s19, %s1737_s1 }
  0x15   : > { %p1513_p13 = pneg %p1497_p11 }
  0x17   : > { %p1210_p0 = pnand %p1513_p13, %p1208_p12 }
  0x19   : > { %p1211_p3 = pneg %p1210_p0 }
  0x1b   : > { %p1216_p7 = pnand %p1214_p5, %p1211_p3 }
  0x1d   : > { %1219 = shalt.err (!%p1216_p7)
}
  0x1e   : > { %s1220_s10 = scalar_lea.vmem %s1490_s11, 2048  ;;  %p1228_p2 = scmp.lt.s32.totalorder %s1490_s11, %s1490_s11 }
  0x1f   : > { %p1221_p9 = scmp.ne.s32.totalorder %s1490_s11, %s1220_s10  ;;  %p1229_p6 = scmp.lt.s32.totalorder %s1220_s10, %s1220_s10 }
  0x21   : > { %p1223_p10 = pnand %p1221_p9, %p1513_p13  ;;  %p1230_p12 = por %p1229_p6, %p1228_p2 }
  0x23   : > { %p1224_p1 = pneg %p1223_p10 }
  0x25   : > { %p1231_p0 = pnand %p1230_p12, %p1224_p1 }
  0x27   : > { %1234 = shalt.err (!%p1231_p0)
}
  0x28   : > { %s1400_s13 = smov 128   ;;  %s1401_s15 = smov 8  }
  0x29   : > { %1129 = dma.hbm_to_vmem [thread:$0]  (!%p1497_p11), %s1737_s1, 2048, %s1490_s11, [#allocation6], %s1400_s13, %s1400_s13, %s1401_s15  }
  0x2a   : > { %s1235_s21 = scalar_lea.hbm %s1739_s3, 2048 }
  0x2b   : > { %p1236_p1 = scmp.ne.s32.totalorder %s1739_s3, %s1235_s21  ;;  %p1242_p10 = scmp.lt.u32.totalorder %s1235_s21, %s1739_s3 }
  0x2d   : > { %p1238_p2 = pnand %p1236_p1, %p1513_p13 }
  0x2f   : > { %p1239_p6 = pneg %p1238_p2 }
  0x31   : > { %p1244_p3 = pnand %p1242_p10, %p1239_p6 }
  0x33   : > { %1247 = shalt.err (!%p1244_p3)
}
  0x34   : > { %s1248_s11 = scalar_lea.vmem %s1501_s14, 2048  ;;  %p1256_p12 = scmp.lt.s32.totalorder %s1501_s14, %s1501_s14 }
  0x35   : > { %p1249_p5 = scmp.ne.s32.totalorder %s1501_s14, %s1248_s11  ;;  %p1257_p0 = scmp.lt.s32.totalorder %s1248_s11, %s1248_s11 }
  0x37   : > { %p1251_p7 = pnand %p1249_p5, %p1513_p13  ;;  %p1258_p1 = por %p1257_p0, %p1256_p12 }
  0x39   : > { %p1252_p9 = pneg %p1251_p7 }
  0x3b   : > { %p1259_p2 = pnand %p1258_p1, %p1252_p9 }
  0x3d   : > { %1262 = shalt.err (!%p1259_p2)
}
  0x3e   : > { %1132 = dma.hbm_to_vmem [thread:$0]  (!%p1497_p11), %s1739_s3, 2048, %s1501_s14, [#allocation6], %s1400_s13, %s1400_s13, %s1401_s15  }
  0x3f   : > { %s1263_s20 = scalar_lea.hbm %s1741_s5, 2048 }
  0x40   : > { %p1264_p6 = scmp.ne.s32.totalorder %s1741_s5, %s1263_s20  ;;  %p1270_p5 = scmp.lt.u32.totalorder %s1263_s20, %s1741_s5 }
  0x42   : > { %p1266_p10 = pnand %p1264_p6, %p1513_p13 }
  0x44   : > { %p1267_p3 = pneg %p1266_p10 }
  0x46   : > { %p1272_p7 = pnand %p1270_p5, %p1267_p3 }
  0x48   : > { %1275 = shalt.err (!%p1272_p7)
}
  0x49   : > { %s1276_s11 = scalar_lea.vmem %s253_s16, 2048  ;;  %p1284_p1 = scmp.lt.s32.totalorder %s253_s16, %s253_s16 }
  0x4a   : > { %p1277_p9 = scmp.ne.s32.totalorder %s253_s16, %s1276_s11  ;;  %p1285_p2 = scmp.lt.s32.totalorder %s1276_s11, %s1276_s11 }
  0x4c   : > { %p1279_p12 = pnand %p1277_p9, %p1513_p13  ;;  %p1286_p4 = por %p1285_p2, %p1284_p1 }
  0x4e   : > { %p1280_p0 = pneg %p1279_p12 }
  0x50   : > { %p1287_p8 = pnand %p1286_p4, %p1280_p0 }
  0x52   : > { %1290 = shalt.err (!%p1287_p8)
}
  0x53   : > { %1135 = dma.hbm_to_vmem [thread:$0]  (!%p1497_p11), %s1741_s5, 2048, %s253_s16, [#allocation9], %s1400_s13, %s1400_s13, %s1401_s15  }
  0x54   : > { %s1586_s22 = sadd.s32 1, %s1395_s27   ;;  %s32_s17 = sadd.s32 1, %s1391_s26 }
  0x55   : > { %s29_s12 = ssub.s32 %s1395_s27, %s1586_s22  ;;  %p39_p8 = scmp.ne.s32.totalorder %s1391_s26, %s1387_s25 }
  0x56   : > { %p30_p4 = scmp.eq.s32.totalorder %s29_s12, 0  ;;  %p40_p13 = scmp.eq.s32.totalorder %s1395_s27, 0 }
  0x57   : > { %p1147_p6 = scmp.lt.s32.totalorder %s1395_s27, 2  ;;  %p1754_p3 = scmp.eq.s32.totalorder %s1467_s28, 1 }
  0x58   : > { %s1596_s18 = scalar_select %p30_p4, %s1391_s26, %s32_s17  }
  0x59   : > { %p41_p10 = por %p40_p13, %p39_p8  ;;  %p1600_p5 = por %p1754_p3, %p39_p8 }
  0x5a   : > { %s269_s20 = sand.u32 1, %s1391_s26   ;;  %s822_s21 = sshll.u32 %s1395_s27, 9 }
  0x5b   : > { %s805_s16 = sshll.u32 %s269_s20, 5  ;;  %s1609_s10 = scalar_lea.hbm %s1736_s0, %s822_s21 }
  0x5c   : > { %s273_s11 = scalar_lea.vmem [#allocation2], %s805_s16  ;;  %p1611_p11 = pnand %p1147_p6, %p41_p10 }
  0x5d   : > { %s280_s14 = sshll.u32 %s273_s11, 4  ;;  %s1617_s12 = scalar_lea.sflag [#allocation3], %s269_s20  ;;  %s1615_s14 = int_to_ptr.vmem [resolvable:$true] %s280_s14 }
  0x5e   : > { %s1291_s17 = scalar_lea.hbm %s1609_s10, 512  ;;  %p1293_p9 = pneg %p1611_p11 }
  0x5f   : > { %p1292_p7 = scmp.ne.s32.totalorder %s1609_s10, %s1291_s17  ;;  %s1296_s23 = scalar_lea.hbm %s1736_s0, 1024 }
  0x60   : > { %p1297_p1 = scmp.lt.u32.totalorder %s1609_s10, %s1736_s0  ;;  %p1298_p2 = scmp.lt.u32.totalorder %s1296_s23, %s1291_s17 }
  0x61   : > { %p1294_p12 = pnand %p1293_p9, %p1292_p7  ;;  %p1300_p8 = scmp.lt.u32.totalorder %s1291_s17, %s1609_s10 }
  0x62   : > { %p1299_p4 = por %p1298_p2, %p1297_p1 }
  0x63   : > { %p1295_p0 = pneg %p1294_p12 }
  0x64   : > { %p1301_p13 = por %p1300_p8, %p1299_p4 }
  0x66   : > { %p1302_p6 = pnand %p1301_p13, %p1295_p0 }
  0x68   : > { %1305 = shalt.err (!%p1302_p6)
}
  0x69   : > { %s1306_s20 = scalar_lea.vmem %s1615_s14, 512  ;;  %s1402_s21 = smov [#allocation2]  }
  0x6a   : > { %p1307_p10 = scmp.ne.s32.totalorder %s1615_s14, %s1306_s20  ;;  %s1311_s16 = sshll.u32 %s1402_s21, 4  ;;  %s1312_s16 = int_to_ptr.vmem [resolvable:$false] %s1311_s16 }
  0x6b   : > { %s1313_s29 = scalar_lea.vmem %s1312_s16, 1024  ;;  %p1314_p12 = scmp.lt.s32.totalorder %s1615_s14, %s1312_s16 }
  0x6c   : > { %p1309_p3 = pnand %p1307_p10, %p1293_p9  ;;  %p1315_p1 = scmp.lt.s32.totalorder %s1313_s29, %s1306_s20 }
  0x6e   : > { %p1310_p7 = pneg %p1309_p3  ;;  %p1316_p2 = por %p1315_p1, %p1314_p12 }
  0x70   : > { %p1317_p4 = pnand %p1316_p2, %p1310_p7 }
  0x72   : > { %1320 = shalt.err (!%p1317_p4)
}
  0x73   : > { %1139 = dma.hbm_to_vmem [thread:$0]  (!%p1611_p11), %s1609_s10, 512, %s1615_s14, %s1617_s12, %s1400_s13, %s1400_s13, %s1401_s15  }
  0x74   : > { %p1757_p9 = scmp.ne.s32.totalorder %s1751_s9, 0 }
  0x75   : > { %s1651_s17 = sand.u32 (!%p1757_p9), 1, %s1387_s25   ;;  %p1758_p0 = scmp.ne.s32.totalorder (!%p1757_p9), %s1748_s30, 0 }
  0x76   : > { %292 = sbr.rel (%p1757_p9) target bundleno = 856 (0x358), region = 48  ;;  %s809_s23 = sshll.u32 (!%p1757_p9), %s1651_s17, 5 }
  0x77   : > { %s295_s11 = scalar_lea.sflag (!%p1757_p9), [#allocation3], %s1651_s17  ;;  %s1657_s8 = scalar_lea.vmem (!%p1757_p9), [#allocation2], %s809_s23 }
  0x7d   : > { %1366 = dma.done.wait (%p1758_p0), %s295_s11, 512  }
  0x7e   : > { %1368 = vsyncadd (%p1758_p0), %s295_s11, 4294966784  ;;  %p1759_p11 = scmp.eq.s32.totalorder %s1467_s28, 0 }
  0x80   : > { %1370 = dma.done.wait (%p1759_p11), [#allocation6], 4096   ;;  %p1760_p8 = pmov %p1759_p11 }
  0x82   : > { %1372 = vsyncadd (%p1760_p8), [#allocation6], 4294963200  ;;  %p1761_p13 = pmov %p1760_p8 }
  0x83   : > { %p1762_p6 = pmov %p1760_p8 }
  0x84   : > { %1374 = dma.done.wait (%p1761_p13), [#allocation9], 2048  }
  0x85   : > { %1376 = vsyncadd (%p1762_p6), [#allocation9], 4294965248  ;;  %v347_v0 = vld [vmem:[#allocation5] sm:$0xff]  ;;  %v348_v1 = vld [vmem:[#allocation5 + $0x8] sm:$0xff]  ;;  %s340_s12 = scalar_lea.vmem [#allocation10], %s809_s23  ;;  %s823_s21 = sshll.u32 %s1467_s28, 9 }
  0x86   : > { %v349_v2 = vld [vmem:[#allocation5 + $0x10] sm:$0xff]  ;;  %v998_v3 = vpack.c.bf16 %v348_v1, %v347_v0  ;;  %v350_v4 = vld [vmem:[#allocation5 + $0x18] sm:$0xff]  ;;  %v351_v6 = vld [vmem:[#allocation5 + $0x20] sm:$0xff]  ;;  %s697_s20 = sshll.u32 %s340_s12, 4  ;;  %s1692_s11 = scalar_lea.hbm %s1743_s7, %s823_s21  ;;  %s1687_s20 = int_to_ptr.vmem [resolvable:$true] %s697_s20 }
  0x87   : > { %v1002_v5 = vpack.c.bf16 %v350_v4, %v349_v2  ;;  %v352_v7 = vld [vmem:[#allocation5 + $0x28] sm:$0xff]  ;;  %v343_v9 = vld [vmem:[%s1657_s8] sm:$0xff]  ;;  %v353_v10 = vld [vmem:[#allocation5 + $0x30] sm:$0xff]  ;;  %s684_s23 = scalar_lea.sflag [#allocation4], %s1651_s17  ;;  %s1321_s28 = scalar_lea.vmem %s1687_s20, 512 }
  0x88   : > { %999 = vmatprep.subr.bf16.mxu0 %v998_v3  ;;  %v1006_v8 = vpack.c.bf16 %v352_v7, %v351_v6  ;;  %v354_v11 = vld [vmem:[#allocation5 + $0x38] sm:$0xff]  ;;  %916 = vmatprep.mubr.f32.mxu0 %v343_v9  ;;  %v459_v12 = vld [vmem:[#allocation7] sm:$0xff]  ;;  %v460_v13 = vld [vmem:[#allocation7 + $0x8] sm:$0xff]  ;;  %p1322_p10 = scmp.ne.s32.totalorder %s1687_s20, %s1321_s28 }
  0x89   : > { %1001 = vmatpush3.bf16.msra.mxu0 %v998_v3  ;;  %v461_v14 = vld [vmem:[#allocation7 + $0x10] sm:$0xff]  ;;  %v462_v15 = vld [vmem:[#allocation7 + $0x18] sm:$0xff]  ;;  %v1030_v16 = vpack.c.bf16 %v460_v13, %v459_v12  ;;  %v1010_v18 = vpack.c.bf16 %v354_v11, %v353_v10  ;;  %v463_v19 = vld [vmem:[#allocation7 + $0x20] sm:$0xff] }
  0x8a   : > { %1003 = vmatprep.subr.bf16.mxu0 %v1002_v5  ;;  %v1034_v17 = vpack.c.bf16 %v462_v15, %v461_v14  ;;  %v464_v20 = vld [vmem:[#allocation7 + $0x28] sm:$0xff]  ;;  %v355_v21 = vld [vmem:[#allocation5 + $0x40] sm:$0xff]  ;;  %v465_v25 = vld [vmem:[#allocation7 + $0x30] sm:$0xff]  ;;  %p1323_p3 = pnand %p1322_p10, %p1600_p5 }
  0x8b   : > { %v356_v22 = vld [vmem:[#allocation5 + $0x48] sm:$0xff]  ;;  %1031 = vmatprep.subr.bf16.mxu1 %v1030_v16  ;;  %v1038_v23 = vpack.c.bf16 %v464_v20, %v463_v19  ;;  %v466_v26 = vld [vmem:[#allocation7 + $0x38] sm:$0xff]  ;;  %v357_v27 = vld [vmem:[#allocation5 + $0x50] sm:$0xff] }
  0x8c   : > { %1033 = vmatpush3.bf16.msra.mxu1 %v1030_v16  ;;  %v1014_v24 = vpack.c.bf16 %v356_v22, %v355_v21  ;;  %v358_v28 = vld [vmem:[#allocation5 + $0x58] sm:$0xff]  ;;  %v1042_v29 = vpack.c.bf16 %v466_v26, %v465_v25  ;;  %v359_v31 = vld [vmem:[#allocation5 + $0x60] sm:$0xff]  ;;  %v360_v32 = vld [vmem:[#allocation5 + $0x68] sm:$0xff]  ;;  %p1324_p7 = pneg %p1323_p3 }
  0x8d   : > { %1005 = vmatpush3.bf16.msra.mxu0 %v1002_v5  ;;  %1035 = vmatprep.subr.bf16.mxu1 %v1034_v17  ;;  %v1018_v30 = vpack.c.bf16 %v358_v28, %v357_v27  ;;  %v1022_v33 = vpack.c.bf16 %v360_v32, %v359_v31  ;;  %v361_v34 = vld [vmem:[#allocation5 + $0x70] sm:$0xff]  ;;  %v362_v35 = vld [vmem:[#allocation5 + $0x78] sm:$0xff]  ;;  %v344_v37 = vld [vmem:[%s1657_s8 + $0x8] sm:$0xff] }
  0x8e   : > { %1007 = vmatprep.subr.bf16.mxu0 %v1006_v8  ;;  %v1026_v36 = vpack.c.bf16 %v362_v35, %v361_v34  ;;  %v345_v38 = vld [vmem:[%s1657_s8 + $0x10] sm:$0xff]  ;;  %v346_v39 = vld [vmem:[%s1657_s8 + $0x18] sm:$0xff]  ;;  %v467_v40 = vld [vmem:[#allocation7 + $0x40] sm:$0xff]  ;;  %s1403_s8 = smov [#allocation10]  }
  0x8f   : > { %v468_v41 = vld [vmem:[#allocation7 + $0x48] sm:$0xff]  ;;  %v469_v43 = vld [vmem:[#allocation7 + $0x50] sm:$0xff]  ;;  %v470_v44 = vld [vmem:[#allocation7 + $0x58] sm:$0xff]  ;;  %s1325_s30 = sshll.u32 %s1403_s8, 4  ;;  %s1326_s30 = int_to_ptr.vmem [resolvable:$false] %s1325_s30 }
  0x90   : > { %1037 = vmatpush3.bf16.msra.mxu1 %v1034_v17  ;;  %v1046_v42 = vpack.c.bf16 %v468_v41, %v467_v40  ;;  %v1050_v45 = vpack.c.bf16 %v470_v44, %v469_v43  ;;  %v471_v46 = vld [vmem:[#allocation7 + $0x60] sm:$0xff]  ;;  %v472_v47 = vld [vmem:[#allocation7 + $0x68] sm:$0xff]  ;;  %v473_v49 = vld [vmem:[#allocation7 + $0x70] sm:$0xff]  ;;  %s1327_s9 = scalar_lea.vmem %s1326_s30, 1024  ;;  %p1328_p12 = scmp.lt.s32.totalorder %s1687_s20, %s1326_s30 }
  0x91   : > { %1009 = vmatpush3.bf16.msra.mxu0 %v1006_v8  ;;  %1039 = vmatprep.subr.bf16.mxu1 %v1038_v23  ;;  %v1054_v48 = vpack.c.bf16 %v472_v47, %v471_v46  ;;  %v474_v50 = vld [vmem:[#allocation7 + $0x78] sm:$0xff]  ;;  %v571_v52 = vld [vmem:[#allocation8] sm:$0xff]  ;;  %v572_v53 = vld [vmem:[#allocation8 + $0x8] sm:$0xff]  ;;  %p1329_p1 = scmp.lt.s32.totalorder %s1327_s9, %s1321_s28 }
  0x92   : > { %1011 = vmatprep.subr.bf16.mxu0 %v1010_v18  ;;  %v1058_v51 = vpack.c.bf16 %v474_v50, %v473_v49  ;;  %v573_v54 = vld [vmem:[#allocation8 + $0x10] sm:$0xff]  ;;  %v1062_v55 = vpack.c.bf16 %v572_v53, %v571_v52  ;;  %v574_v56 = vld [vmem:[#allocation8 + $0x18] sm:$0xff]  ;;  %v575_v58 = vld [vmem:[#allocation8 + $0x20] sm:$0xff] }
  0x93   : > { %v1066_v57 = vpack.c.bf16 %v574_v56, %v573_v54  ;;  %v576_v59 = vld [vmem:[#allocation8 + $0x28] sm:$0xff]  ;;  %v577_v61 = vld [vmem:[#allocation8 + $0x30] sm:$0xff]  ;;  %v578_v62 = vld [vmem:[#allocation8 + $0x38] sm:$0xff]  ;;  %p1330_p2 = por %p1329_p1, %p1328_p12 }
  0x94   : > { %1041 = vmatpush3.bf16.msra.mxu1 %v1038_v23  ;;  %v1070_v60 = vpack.c.bf16 %v576_v59, %v575_v58  ;;  %v1074_v63 = vpack.c.bf16 %v578_v62, %v577_v61  ;;  %v814_v0 = vld [vmem:[%s1738_s2] ss:$0 sm:$0xff]  ;;  %v580_v14 = vld [vmem:[#allocation8 + $0x48] sm:$0xff]  ;;  %v581_v16 = vld [vmem:[#allocation8 + $0x50] sm:$0xff] }
  0x95   : > { %1013 = vmatpush3.bf16.msra.mxu0 %v1010_v18  ;;  %1043 = vmatprep.subr.bf16.mxu1 %v1042_v29  ;;  %v579_v13 = vld [vmem:[#allocation8 + $0x40] sm:$0xff]  ;;  %v582_v17 = vld [vmem:[#allocation8 + $0x58] sm:$0xff]  ;;  %v584_v20 = vld [vmem:[#allocation8 + $0x68] sm:$0xff]  ;;  %p1331_p4 = pnand %p1330_p2, %p1324_p7 }
  0x96   : > { %1015 = vmatprep.subr.bf16.mxu0 %v1014_v24  ;;  %v1078_v15 = vpack.c.bf16 %v580_v14, %v579_v13  ;;  %v1082_v18 = vpack.c.bf16 %v582_v17, %v581_v16  ;;  %v583_v19 = vld [vmem:[#allocation8 + $0x60] sm:$0xff]  ;;  %v585_v22 = vld [vmem:[#allocation8 + $0x70] sm:$0xff]  ;;  %v586_v23 = vld [vmem:[#allocation8 + $0x78] sm:$0xff] }
  0x97   : > { %v1086_v21 = vpack.c.bf16 %v584_v20, %v583_v19  ;;  %v815_v25 = vld [vmem:[%s1740_s4] ss:$0 sm:$0xff] }
  0x98   : > { %1045 = vmatpush3.bf16.msra.mxu1 %v1042_v29 }
  0x99   : > { %1017 = vmatpush3.bf16.msra.mxu0 %v1014_v24  ;;  %1047 = vmatprep.subr.bf16.mxu1 %v1046_v42  ;;  %v1090_v24 = vpack.c.bf16 %v586_v23, %v585_v22 }
  0x9a   : > { %1019 = vmatprep.subr.bf16.mxu0 %v1018_v30 }
  0x9c   : > { %1049 = vmatpush3.bf16.msra.mxu1 %v1046_v42 }
  0x9d   : > { %1021 = vmatpush3.bf16.msra.mxu0 %v1018_v30  ;;  %1051 = vmatprep.subr.bf16.mxu1 %v1050_v45 }
  0x9e   : > { %1023 = vmatprep.subr.bf16.mxu0 %v1022_v33 }
  0xa0   : > { %1053 = vmatpush3.bf16.msra.mxu1 %v1050_v45 }
  0xa1   : > { %1025 = vmatpush3.bf16.msra.mxu0 %v1022_v33  ;;  %1055 = vmatprep.subr.bf16.mxu1 %v1054_v48 }
  0xa2   : > { %1027 = vmatprep.subr.bf16.mxu0 %v1026_v36 }
  0xa4   : > { %1057 = vmatpush3.bf16.msra.mxu1 %v1054_v48 }
  0xa5   : > { %1029 = vmatpush3.bf16.msra.mxu0 %v1026_v36  ;;  %1059 = vmatprep.subr.bf16.mxu1 %v1058_v51 }
  0xa6   : > { %1063 = vmatprep.subr.bf16.mxu0 %v1062_v55 }
  0xa8   : > { %917 = vmatmul.mubr.f32.vlgmr.msra.gmra.mrb[0].mxu0 %v344_v37  ;;  %1061 = vmatpush3.bf16.msra.mxu1 %v1058_v51 }
  0xa9   : > { %919 = vmatprep.mubr.f32.mxu0 %v345_v38  ;;  %1094 = vmatprep.subr.bf16.mxu1 %v1062_v55  ;;  %v816_v38 = vld [vmem:[%s1742_s6] ss:$0 sm:$0xff] }
  0xaa   : > { %1065 = vmatpush3.bf16.msra.mxu0 %v1062_v55 }
  0xab   : > { %1067 = vmatprep.subr.bf16.mxu0 %v1066_v57 }
  0xac   : > { %920 = vmatmul.mubr.f32.gmra.mrb[2].mxu0 %v346_v39 }
  0xae   : > { %1069 = vmatpush3.bf16.msra.mxu0 %v1066_v57 }
  0xaf   : > { %1071 = vmatprep.subr.bf16.mxu0 %v1070_v60 }
  0xb2   : > { %1073 = vmatpush3.bf16.msra.mxu0 %v1070_v60 }
  0xb3   : > { %1075 = vmatprep.subr.bf16.mxu0 %v1074_v63 }
  0xb6   : > { %1077 = vmatpush3.bf16.msra.mxu0 %v1074_v63 }
  0xb7   : > { %1079 = vmatprep.subr.bf16.mxu0 %v1078_v15 }
  0xba   : > { %1081 = vmatpush3.bf16.msra.mxu0 %v1078_v15 }
  0xbb   : > { %1083 = vmatprep.subr.bf16.mxu0 %v1082_v18 }
  0xbe   : > { %1085 = vmatpush3.bf16.msra.mxu0 %v1082_v18 }
  0xbf   : > { %1087 = vmatprep.subr.bf16.mxu0 %v1086_v21 }
  0xc2   : > { %1089 = vmatpush3.bf16.msra.mxu0 %v1086_v21 }
  0xc3   : > { %1091 = vmatprep.subr.bf16.mxu0 %v1090_v24 }
  0xc6   : > { %1093 = vmatpush3.bf16.msra.mxu0 %v1090_v24 }
 0x17b   : > { %v918_v1 = vpop.f32.mrb[0].mxu0 }
 0x17c   : > { %v442_v2 = vadd.f32 %v918_v1, %v814_v0  ;;  %v436_v3 = vpop.f32.mrb[1].mxu0 }
 0x17d   : > { %v437_v4 = vadd.f32 %v814_v0, %v436_v3 }
 0x17f   : > { %1191 = vtanh.f32 %v437_v4  ;;  %v921_v5 = vpop.f32.mrb[2].mxu0 }
 0x180   : > { %1193 = vtanh.f32 %v442_v2  ;;  %v452_v6 = vadd.f32 %v921_v5, %v814_v0  ;;  %v446_v7 = vpop.f32.mrb[3].mxu0 }
 0x181   : > { %v447_v8 = vadd.f32 %v814_v0, %v446_v7 }
 0x183   : > { %1195 = vtanh.f32 %v447_v8 }
 0x184   : > { %1197 = vtanh.f32 %v452_v6 }
 0x189   : > { %v1192_v9 = vpop.eup %1191 }
 0x18a   : > { %v1194_v10 = vpop.eup %1193  ;;  %954 = vmatprep.mubr.f32.mxu1 %v1192_v9 }
 0x18b   : > { %955 = vmatmul.mubr.f32.vlgmr.msra.gmra.mrb[0].mxu1 %v1194_v10 }
 0x18c   : > { %1102 = vmatpush3.bf16.msra.mxu1 %v1062_v55 }
 0x18d   : > { %v1196_v11 = vpop.eup %1195  ;;  %1095 = vmatprep.subr.bf16.mxu1 %v1066_v57 }
 0x18e   : > { %v1198_v12 = vpop.eup %1197  ;;  %957 = vmatprep.mubr.f32.mxu1 %v1196_v11 }
 0x18f   : > { %958 = vmatmul.mubr.f32.gmra.mrb[2].mxu1 %v1198_v12 }
 0x190   : > { %1103 = vmatpush3.bf16.msra.mxu1 %v1066_v57 }
 0x191   : > { %1096 = vmatprep.subr.bf16.mxu1 %v1070_v60 }
 0x194   : > { %1104 = vmatpush3.bf16.msra.mxu1 %v1070_v60 }
 0x195   : > { %1097 = vmatprep.subr.bf16.mxu1 %v1074_v63 }
 0x198   : > { %1105 = vmatpush3.bf16.msra.mxu1 %v1074_v63 }
 0x199   : > { %1098 = vmatprep.subr.bf16.mxu1 %v1078_v15 }
 0x19c   : > { %1106 = vmatpush3.bf16.msra.mxu1 %v1078_v15 }
 0x19d   : > { %1099 = vmatprep.subr.bf16.mxu1 %v1082_v18 }
 0x1a0   : > { %1107 = vmatpush3.bf16.msra.mxu1 %v1082_v18 }
 0x1a1   : > { %1100 = vmatprep.subr.bf16.mxu1 %v1086_v21 }
 0x1a4   : > { %1108 = vmatpush3.bf16.msra.mxu1 %v1086_v21 }
 0x1a5   : > { %1101 = vmatprep.subr.bf16.mxu1 %v1090_v24 }
 0x1a8   : > { %1109 = vmatpush3.bf16.msra.mxu1 %v1090_v24 }
 0x25e   : > { %v956_v26 = vpop.f32.mrb[0].mxu1 }
 0x25f   : > { %v554_v27 = vadd.f32 %v956_v26, %v815_v25  ;;  %v548_v28 = vpop.f32.mrb[1].mxu1 }
 0x260   : > { %v549_v29 = vadd.f32 %v815_v25, %v548_v28 }
 0x262   : > { %1199 = vtanh.f32 %v549_v29  ;;  %v959_v30 = vpop.f32.mrb[2].mxu1 }
 0x263   : > { %1201 = vtanh.f32 %v554_v27  ;;  %v564_v31 = vadd.f32 %v959_v30, %v815_v25  ;;  %v558_v32 = vpop.f32.mrb[3].mxu1 }
 0x264   : > { %v559_v33 = vadd.f32 %v815_v25, %v558_v32 }
 0x266   : > { %1203 = vtanh.f32 %v559_v33 }
 0x267   : > { %1205 = vtanh.f32 %v564_v31 }
 0x26c   : > { %v1200_v34 = vpop.eup %1199 }
 0x26d   : > { %v1202_v35 = vpop.eup %1201  ;;  %992 = vmatprep.mubr.f32.mxu0 %v1200_v34 }
 0x26e   : > { %993 = vmatmul.mubr.f32.vlgmr.msra.gmra.mrb[4].mxu0 %v1202_v35 }
 0x270   : > { %v1204_v36 = vpop.eup %1203 }
 0x271   : > { %v1206_v37 = vpop.eup %1205  ;;  %995 = vmatprep.mubr.f32.mxu1 %v1204_v36 }
 0x272   : > { %996 = vmatmul.mubr.f32.vlgmr.msra.gmra.mrb[4].mxu1 %v1206_v37 }
 0x341   : > { %v994_v39 = vpop.f32.mrb[4].mxu0 }
 0x342   : > { %v666_v40 = vadd.f32 %v994_v39, %v816_v38  ;;  %v660_v41 = vpop.f32.mrb[5].mxu0 }
 0x343   : > { %v661_v42 = vadd.f32 %v816_v38, %v660_v41 }
 0x344   : > { %680 = vst [vmem:[%s340_s12 + $0x8] sm:$0xff] %v666_v40 }
 0x345   : > { %679 = vst [vmem:[%s340_s12] sm:$0xff] %v661_v42  ;;  %v997_v43 = vpop.f32.mrb[4].mxu1 }
 0x346   : > { %v676_v44 = vadd.f32 %v997_v43, %v816_v38  ;;  %v670_v45 = vpop.f32.mrb[5].mxu1 }
 0x347   : > { %v671_v46 = vadd.f32 %v816_v38, %v670_v45 }
 0x348   : > { %682 = vst [vmem:[%s340_s12 + $0x18] sm:$0xff] %v676_v44 }
 0x349   : > { %681 = vst [vmem:[%s340_s12 + $0x10] sm:$0xff] %v671_v46 }
 0x34a   : > { %1334 = shalt.err (!%p1331_p4)
}
 0x34b   : > { %s1335_s13 = scalar_lea.hbm %s1692_s11, 512  ;;  %s1339_s14 = scalar_lea.hbm %s1743_s7, 1024 }
 0x34c   : > { %p1336_p9 = scmp.ne.s32.totalorder %s1692_s11, %s1335_s13  ;;  %p1340_p8 = scmp.lt.u32.totalorder %s1692_s11, %s1743_s7 }
 0x34d   : > { %p1341_p13 = scmp.lt.u32.totalorder %s1339_s14, %s1335_s13  ;;  %p1343_p10 = scmp.lt.u32.totalorder %s1335_s13, %s1692_s11 }
 0x34e   : > { %p1337_p0 = pnand %p1336_p9, %p1600_p5 }
 0x34f   : > { %p1342_p6 = por %p1341_p13, %p1340_p8 }
 0x350   : > { %p1338_p11 = pneg %p1337_p0 }
 0x351   : > { %p1344_p3 = por %p1343_p10, %p1342_p6 }
 0x353   : > { %p1345_p7 = pnand %p1344_p3, %p1338_p11 }
 0x355   : > { %1348 = shalt.err (!%p1345_p7)
}
 0x356   : > { %s1404_s16 = smov 128   ;;  %s1405_s29 = smov 8  }
 0x357   : > { %1124 = dma.vmem_to_hbm [thread:$0]  (%p1600_p5), %s1687_s20, 512, %s1692_s11, %s684_s23, %s1404_s16, %s1404_s16, %s1405_s29  }
 0x358 PF: > { %s1763_s28 = sld [smem:[#allocation15_spill]]  ;;  %s712_s8 = sand.u32 1, %s1383_s24  }
 0x359   : > { %p1765_p1 = scmp.ge.s32.totalorder %s1395_s27, 2  ;;  %s713_s30 = scalar_lea.sflag [#allocation4], %s712_s8 }
 0x35e   : > { %p1764_p12 = scmp.ne.s32.totalorder %s1763_s28, 0 }
 0x360   : > { %p1141_p2 = pnand %p1765_p1, %p1764_p12 }
 0x362   : > { %1378 = dma.done.wait (!%p1141_p2), %s713_s30, 512  }
 0x363   : > { %1380 = vsyncadd (!%p1141_p2), %s713_s30, 4294966784  ;;  %p22_p4 = scmp.ge.s32.totalorder %s1586_s22, 4   ;;  %s1766_s24 = smov %s1387_s25 }
 0x364   : > { %s1767_s25 = smov %s1391_s26  ;;  %s1768_s26 = smov %s1596_s18 }
 0x365   : > { %s1769_s27 = smov %s1586_s22  ;;  %24 = sbr.rel (!%p22_p4) target bundleno = 7 (0x7), region = 105 }
 0x36c   :  { %718 = vsyncpa [#allocation3], 1 }
 0x36d   :  { %720 = vsyncpa [#allocation3 + $0x1], 1 }
 0x36e   :  { %721 = vsyncpa [#allocation6], 1 }
 0x36f   :  { %722 = vsyncpa [#allocation9], 1 }
 0x370   :  { %723 = vsyncpa [#allocation4], 1 }
 0x371   :  { %725 = vsyncpa [#allocation4 + $0x1], 1 }

</bundles_post_ra>
